<compile_context>
chip_gen: v7x
topology: tpu7x:2x2x1
jax: 0.10.0
libtpu: 0.0.40
codegen_flags: <defaults>
</compile_context>

<pallas_src>
import functools

import jax
import jax.numpy as jnp
from jax import lax
from jax.experimental import pallas as pl
from jax.experimental.pallas import tpu as pltpu


# ----------------------------- hardware budget --------------------------------

def _vmem_capacity_bytes():
    try:
        info = pltpu.get_tpu_info()
        cap = getattr(info, "vmem_capacity_bytes", None)
        if cap:
            return int(cap)
    except Exception:
        pass
    return 64 * 1024 * 1024          # conservative (v7x-sized) fallback


def _budgets(block_budget_override=None):
    cap = _vmem_capacity_bytes()
    # Per-input-block budget: ~8 MiB on 128 MiB chips (v5e/v6e), ~4 MiB on v7x.
    if block_budget_override is None:
        block_budget = cap // 16
    else:
        block_budget = int(block_budget_override)
    block_budget = max(block_budget, 8 * 1024)
    # Scoped VMEM limit with headroom for 2x double-buffered input blocks,
    # output blocks, the f32 accumulator and the cast temporary.
    vmem_limit = min(cap // 2, 64 * 1024 * 1024)
    return block_budget, vmem_limit


def _round_down_mult(x, m):
    return (x // m) * m


def _prod(xs):
    p = 1
    for s in xs:
        p *= int(s)
    return p


# ------------------------------- kernels --------------------------------------

def _mean_mid_kernel(x_ref, o_ref, acc_ref, *, inv_n, red, mask_red):
    # x_ref: [to, tr, ti] (reduce axis 1);  o_ref / acc_ref: [to, ti]
    k = pl.program_id(2)

    @pl.when(k == 0)
    def _():
        acc_ref[...] = jnp.zeros_like(acc_ref)

    x = x_ref[...].astype(jnp.float32)
    if mask_red:                                  # static: only for tail chunks
        tr = x.shape[1]
        idx = k * tr + lax.broadcasted_iota(jnp.int32, x.shape, 1)
        x = jnp.where(idx < red, x, 0.0)
    acc_ref[...] += jnp.sum(x, axis=1)

    @pl.when(k == pl.num_programs(2) - 1)
    def _():
        o_ref[...] = (acc_ref[...] * inv_n).astype(o_ref.dtype)


def _mean_last_kernel(x_ref, o_ref, acc_ref, *, inv_n, red, mask_red):
    # x_ref: [to, tr] (reduce lane axis);  o_ref / acc_ref: [to, 1]
    k = pl.program_id(1)

    @pl.when(k == 0)
    def _():
        acc_ref[...] = jnp.zeros_like(acc_ref)

    x = x_ref[...].astype(jnp.float32)
    if mask_red:
        tr = x.shape[1]
        idx = k * tr + lax.broadcasted_iota(jnp.int32, x.shape, 1)
        x = jnp.where(idx < red, x, 0.0)
    acc_ref[...] += jnp.sum(x, axis=-1, keepdims=True)

    @pl.when(k == pl.num_programs(1) - 1)
    def _():
        o_ref[...] = (acc_ref[...] * inv_n).astype(o_ref.dtype)


# ------------------------------ tile picking -----------------------------------

def _pick_tiles_mid(outer, red, inner, per_elem, budget):
    # Lane (last) axis of the block: full if small/cheap, else a 128 multiple.
    if inner <= 128 or 8 * 8 * inner * per_elem <= budget:
        tile_i = inner
    else:
        tile_i = max(128, _round_down_mult(budget // (8 * 8 * per_elem), 128))
    # Reduction axis (sublane-adjacent): full if it fits, else an 8 multiple.
    if red <= 8 or 8 * red * tile_i * per_elem <= budget:
        tile_r = red
    else:
        tile_r = max(8, _round_down_mult(budget // (8 * tile_i * per_elem), 8))
    # Outer (row) axis: as many rows as the budget allows, 8-aligned.
    max_rows = max(1, budget // (tile_r * tile_i * per_elem))
    if max_rows >= outer or outer <= 8:
        tile_o = outer
    else:
        tile_o = max(8, _round_down_mult(max_rows, 8))
    return tile_o, tile_r, tile_i


def _pick_tiles_last(outer, red, per_elem, budget):
    row_min = outer if outer < 8 else 8
    if red <= 128 or row_min * red * per_elem <= budget:
        tile_r = red
    else:
        tile_r = max(128, _round_down_mult(budget // (row_min * per_elem), 128))
    max_rows = max(1, budget // (tile_r * per_elem))
    if max_rows >= outer or outer <= 8:
        tile_o = outer
    else:
        tile_o = max(8, _round_down_mult(max_rows, 8))
    return tile_o, tile_r


# --------------------------------- wrapper --------------------------------------

def _mean_contig(x, d0, d1, keepdim, block_budget_bytes=None):
    """Mean over the contiguous (inclusive) axis range [d0, d1] of x."""
    nd = x.ndim
    shape = x.shape
    red = _prod(shape[d0:d1 + 1])
    out_dtype = x.dtype
    inv_n = 1.0 / float(red)
    itemsize = jnp.dtype(x.dtype).itemsize
    per_elem = itemsize + 4                      # input element + f32 cast temp
    budget, vmem_limit = _budgets(block_budget_bytes)

    outer = _prod(shape[:d0])
    kept_lead = shape[:d0]
    kept_tail = shape[d1 + 1:]
    if keepdim:
        out_shape_final = kept_lead + (1,) * (d1 - d0 + 1) + kept_tail
    else:
        out_shape_final = kept_lead + kept_tail

    if d1 == nd - 1:
        # ---------------- reduce through the last (lane) axis ----------------
        x2 = x.reshape(outer, red)
        tile_o, tile_r = _pick_tiles_last(outer, red, per_elem, budget)
        grid = (pl.cdiv(outer, tile_o), pl.cdiv(red, tile_r))
        mask_red = (red % tile_r) != 0
        out = pl.pallas_call(
            functools.partial(_mean_last_kernel, inv_n=inv_n, red=red,
                              mask_red=mask_red),
            out_shape=jax.ShapeDtypeStruct((outer, 1), out_dtype),
            grid=grid,
            in_specs=[pl.BlockSpec((tile_o, tile_r), lambda i, k: (i, k))],
            out_specs=pl.BlockSpec((tile_o, 1), lambda i, k: (i, 0)),
            scratch_shapes=[pltpu.VMEM((tile_o, 1), jnp.float32)],
            compiler_params=pltpu.CompilerParams(
                dimension_semantics=("parallel", "arbitrary"),
                vmem_limit_bytes=vmem_limit),
        )(x2)
        return out.reshape(out_shape_final)

    # -------------------- reduce a middle axis range --------------------------
    inner = _prod(shape[d1 + 1:])
    x3 = x.reshape(outer, red, inner)
    tile_o, tile_r, tile_i = _pick_tiles_mid(outer, red, inner, per_elem, budget)
    grid = (pl.cdiv(outer, tile_o), pl.cdiv(inner, tile_i), pl.cdiv(red, tile_r))
    mask_red = (red % tile_r) != 0
    out = pl.pallas_call(
        functools.partial(_mean_mid_kernel, inv_n=inv_n, red=red,
                          mask_red=mask_red),
        out_shape=jax.ShapeDtypeStruct((outer, inner), out_dtype),
        grid=grid,
        in_specs=[pl.BlockSpec((tile_o, tile_r, tile_i),
                               lambda oi, ii, ki: (oi, ki, ii))],
        out_specs=pl.BlockSpec((tile_o, tile_i), lambda oi, ii, ki: (oi, ii)),
        scratch_shapes=[pltpu.VMEM((tile_o, tile_i), jnp.float32)],
        compiler_params=pltpu.CompilerParams(
            dimension_semantics=("parallel", "parallel", "arbitrary"),
            vmem_limit_bytes=vmem_limit),
    )(x3)
    return out.reshape(out_shape_final)


def mean_pallas(x, dim, keepdim=False, *, block_budget_bytes=None):
    """Pallas TPU equivalent of torch.Tensor.mean(dim=dim, keepdim=keepdim)."""
    x = jnp.asarray(x)
    nd = x.ndim
    if isinstance(dim, (tuple, list)):
        dims = sorted(set(int(d) % nd for d in dim))
        # Merge contiguous runs of reduced axes -> one fused kernel pass each.
        runs = []
        start = prev = dims[0]
        for d in dims[1:]:
            if d == prev + 1:
                prev = d
            else:
                runs.append((start, prev))
                start = prev = d
        runs.append((start, prev))
        out = x
        # Reverse order keeps earlier axis indices valid when keepdim=False.
        for d0, d1 in reversed(runs):
            out = _mean_contig(out, d0, d1, keepdim,
                               block_budget_bytes=block_budget_bytes)
        return out
    d = int(dim) % nd
    return _mean_contig(x, d, d, keepdim, block_budget_bytes=block_budget_bytes)


class Mean:
    """JAX/Pallas mirror of the PyTorch nn.Module `Mean`."""

    def __init__(self, dim, keepdim=False):
        self.dim = dim
        self.keepdim = keepdim

    def __call__(self, x):
        return mean_pallas(x, self.dim, self.keepdim)


# ----------------------------------- demo ---------------------------------------

if __name__ == "__main__":
    key = jax.random.PRNGKey(0)
    k1, k2, k3 = jax.random.split(key, 3)

    # Typical RS-TRAN-CLIP usage: Mean(dim=1) pooling over the sequence axis.
    x = jax.random.normal(k1, (2, 8, 128), jnp.float32)

    pooled = Mean(dim=1)(x)                                   # [2, 128]
    jax.block_until_ready(pooled)
    assert pooled.shape == (2, 128)
    assert jnp.allclose(pooled, jnp.mean(x, axis=1), atol=1e-5, rtol=1e-5)

    last = Mean(dim=-1, keepdim=True)(x)                      # [2, 8, 1]
    jax.block_until_ready(last)
    assert last.shape == (2, 8, 1)
    assert jnp.allclose(last, jnp.mean(x, axis=-1, keepdims=True),
                        atol=1e-5, rtol=1e-5)

    both = Mean(dim=(1, 2))(x)                                # [2], fused one-pass
    jax.block_until_ready(both)
    assert both.shape == (2,)
    assert jnp.allclose(both, jnp.mean(x, axis=(1, 2)), atol=1e-5, rtol=1e-5)

    # Awkward (non multiple-of-8/128) sizes with a tiny forced VMEM budget to
    # exercise the cdiv grids, reduction-axis tiling and tail masking paths
    # even at small demo shapes.
    y = jax.random.normal(k2, (20, 37, 160), jnp.float32)
    y_mid = mean_pallas(y, 1, False, block_budget_bytes=32 * 1024)
    jax.block_until_ready(y_mid)
    assert y_mid.shape == (20, 160)
    assert jnp.allclose(y_mid, jnp.mean(y, axis=1), atol=1e-5, rtol=1e-5)

    z = jax.random.normal(k3, (20, 300), jnp.float32)
    z_last = mean_pallas(z, -1, True, block_budget_bytes=8 * 1024)
    jax.block_until_ready(z_last)
    assert z_last.shape == (20, 1)
    assert jnp.allclose(z_last, jnp.mean(z, axis=-1, keepdims=True),
                        atol=1e-5, rtol=1e-5)

    for v in (pooled, last, both, y_mid, z_last):
        assert bool(jnp.all(jnp.isfinite(v)))
    print("KERNEL_OK")
</pallas_src>

<mosaic_0001>
module attributes {stable_mosaic.version = 11 : i64} {
  func.func @_mean_mid_kernel(%arg0: i32, %arg1: i32, %arg2: i32, %arg3: memref<2x8x128xf32, #tpu.memory_space<vmem>>, %arg4: memref<2x128xf32, #tpu.memory_space<vmem>>, %arg5: memref<2x128xf32, #tpu.memory_space<vmem>>) attributes {dimension_semantics = [#tpu.dimension_semantics<parallel>, #tpu.dimension_semantics<parallel>, #tpu.dimension_semantics<arbitrary>], iteration_bounds = array<i64: 1, 1, 1>, scalar_prefetch = 0 : i64, scratch_operands = 1 : i64, tpu.core_type = #tpu.core_type<tc>, window_params = [{transform_indices = @transform_0, window_bounds = array<i64: 2, 8, 128>}, {transform_indices = @transform_1, window_bounds = array<i64: 2, 128>}]} {
    %c0_i32 = arith.constant 0 : i32
    %0 = arith.cmpi eq, %arg2, %c0_i32 : i32
    %1 = arith.extui %0 : i1 to i32
    %c0_i32_0 = arith.constant 0 : i32
    %2 = arith.cmpi ne, %1, %c0_i32_0 : i32
    scf.if %2 {
      %cst_9 = arith.constant 0.000000e+00 : f32
      %11 = vector.broadcast %cst_9 : f32 to vector<2x128xf32>
      %c0_10 = arith.constant 0 : index
      %c0_11 = arith.constant 0 : index
      %12 = vector.load %arg5[%c0_10, %c0_11] : memref<2x128xf32, #tpu.memory_space<vmem>>, vector<2x128xf32>
      tpu.vector_store %arg5[%c0_10, %c0_11], %11 {strides = array<i32>} : memref<2x128xf32, #tpu.memory_space<vmem>>, vector<2x128xf32>,
    } else {
    }
    %c0 = arith.constant 0 : index
    %c0_1 = arith.constant 0 : index
    %c0_2 = arith.constant 0 : index
    %3 = vector.load %arg3[%c0, %c0_1, %c0_2] : memref<2x8x128xf32, #tpu.memory_space<vmem>>, vector<2x8x128xf32>
    %c0_3 = arith.constant 0 : index
    %c0_4 = arith.constant 0 : index
    %4 = vector.load %arg5[%c0_3, %c0_4] : memref<2x128xf32, #tpu.memory_space<vmem>>, vector<2x128xf32>
    %cst = arith.constant dense<0.000000e+00> : vector<2x128xf32>
    %5 = vector.multi_reduction <add>, %3, %cst [1] : vector<2x8x128xf32> to vector<2x128xf32>
    %6 = arith.addf %4, %5 : vector<2x128xf32>
    %c0_5 = arith.constant 0 : index
    %c0_6 = arith.constant 0 : index
    %7 = vector.load %arg5[%c0_5, %c0_6] : memref<2x128xf32, #tpu.memory_space<vmem>>, vector<2x128xf32>
    tpu.vector_store %arg5[%c0_5, %c0_6], %6 {strides = array<i32>} : memref<2x128xf32, #tpu.memory_space<vmem>>, vector<2x128xf32>,
    %c0_i32_7 = arith.constant 0 : i32
    %8 = arith.cmpi eq, %arg2, %c0_i32_7 : i32
    %9 = arith.extui %8 : i1 to i32
    %c0_i32_8 = arith.constant 0 : i32
    %10 = arith.cmpi ne, %9, %c0_i32_8 : i32
    scf.if %10 {
      %c0_9 = arith.constant 0 : index
      %c0_10 = arith.constant 0 : index
      %11 = vector.load %arg5[%c0_9, %c0_10] : memref<2x128xf32, #tpu.memory_space<vmem>>, vector<2x128xf32>
      %cst_11 = arith.constant 1.250000e-01 : f32
      %12 = vector.broadcast %cst_11 : f32 to vector<2x128xf32>
      %13 = arith.mulf %11, %12 : vector<2x128xf32>
      %c0_12 = arith.constant 0 : index
      %c0_13 = arith.constant 0 : index
      %14 = vector.load %arg4[%c0_12, %c0_13] : memref<2x128xf32, #tpu.memory_space<vmem>>, vector<2x128xf32>
      tpu.vector_store %arg4[%c0_12, %c0_13], %13 {strides = array<i32>} : memref<2x128xf32, #tpu.memory_space<vmem>>, vector<2x128xf32>,
    } else {
    }
    return
  }
  func.func @transform_0(%arg0: i32, %arg1: i32, %arg2: i32) -> (i32, i32, i32) {
    %c0_i32 = arith.constant 0 : i32
    return %arg0, %arg2, %arg1 : i32, i32, i32
  }
  func.func @transform_1(%arg0: i32, %arg1: i32, %arg2: i32) -> (i32, i32) {
    %c0_i32 = arith.constant 0 : i32
    return %arg0, %arg1 : i32, i32
  }
}

</mosaic_0001>

<bundles_post_ra>
// kernel: tpu_custom_call.1
= control target key start
LH: loop header
LB: loop body
LE: loop exit
PB: predicated region body
PF: predicated region fallthrough
CT: control target
= control target key end

     0   :  { %6 = vsyncpa [#allocation4], 0  ;;  %s163_s0 = inlined_call_operand.hbm [shape: f32[2,8,128], index: 0, kind: input, shape index: {}]   ;;  %s164_s1 = inlined_call_operand.hbm [shape: f32[2,128], index: 1, kind: output, shape index: {}]  }
   0x1   :  { %7 = vsyncpa [#allocation5], 0  ;;  %s124_s6 = smov [#allocation3]   ;;  %s76_s10 = scalar_lea.hbm %s163_s0, 256 }
   0x2   :  { %s13_s7 = sshll.u32 %s124_s6, 4  ;;  %p77_p0 = scmp.ne.s32.totalorder %s163_s0, %s76_s10  ;;  %s14_s7 = int_to_ptr.vmem [resolvable:$true] %s13_s7 }
   0x3   :  { %p80_p1 = scmp.lt.u32.totalorder %s76_s10, %s163_s0 }
   0x5   :  { %p82_p2 = pnand %p80_p1, %p77_p0 }
   0x7   :  { %85 = shalt.err (!%p82_p2)
}
   0x8   :  { %s86_s15 = scalar_lea.vmem %s14_s7, 256  ;;  %p91_p4 = scmp.lt.s32.totalorder %s14_s7, %s14_s7 }
   0x9   :  { %p87_p3 = scmp.ne.s32.totalorder %s14_s7, %s86_s15  ;;  %p92_p5 = scmp.lt.s32.totalorder %s86_s15, %s86_s15 }
   0xb   :  { %p93_p6 = por %p92_p5, %p91_p4 }
   0xd   :  { %p94_p7 = pnand %p93_p6, %p87_p3 }
   0xf   :  { %97 = shalt.err (!%p94_p7)
}
  0x10   :  { %s125_s16 = smov 128   ;;  %s126_s17 = smov 8  }
  0x11   :  { %19 = dma.hbm_to_vmem [thread:$0]  %s163_s0, 256, %s14_s7, [#allocation4], %s125_s16, %s125_s16, %s126_s17  }
  0x12   :  { %120 = dma.done.wait [#allocation4], 256  }
  0x13   :  { %121 = vsyncadd [#allocation4], 4294967040  ;;  %v127_v0 = vmov 0.0   ;;  %v28_v1 = vld [vmem:[#allocation3] sm:$0xff]  ;;  %v29_v2 = vld [vmem:[#allocation3 + $0x8] sm:$0xff]  ;;  %vm45_vm0 = vcmask 1041409  }
  0x14   :  { %27 = vst [vmem:[#allocation2] sm:$0x3] %v127_v0  ;;  %v31_v3 = vrot.slane %v28_v1, 4  ;;  %v37_v4 = vrot.slane %v29_v2, 4  ;;  %s128_s0 = smov [#allocation6]  }
  0x15   :  { %s62_s20 = sshll.u32 %s128_s0, 4  ;;  %s63_s20 = int_to_ptr.vmem [resolvable:$true] %s62_s20 }
  0x16   :  { %v32_v5 = vadd.f32 %v31_v3, %v28_v1  ;;  %v38_v6 = vadd.f32 %v37_v4, %v29_v2  ;;  %s98_s21 = scalar_lea.vmem %s63_s20, 32  ;;  %p103_p9 = scmp.lt.s32.totalorder %s63_s20, %s63_s20 }
  0x17   :  { %p99_p8 = scmp.ne.s32.totalorder %s63_s20, %s98_s21  ;;  %p104_p10 = scmp.lt.s32.totalorder %s98_s21, %s98_s21 }
  0x18   :  { %v33_v7 = vrot.slane %v32_v5, 2  ;;  %v39_v8 = vrot.slane %v38_v6, 2 }
  0x19   :  { %p105_p11 = por %p104_p10, %p103_p9 }
  0x1a   :  { %v34_v9 = vadd.f32 %v33_v7, %v32_v5  ;;  %v40_v10 = vadd.f32 %v39_v8, %v38_v6 }
  0x1b   :  { %v30_v13 = vld [vmem:[#allocation2] sm:$0x3]  ;;  %p106_p12 = pnand %p105_p11, %p99_p8 }
  0x1c   :  { %v35_v11 = vrot.slane %v34_v9, 1  ;;  %v41_v12 = vrot.slane %v40_v10, 1 }
  0x1e   :  { %v36_v14 = vadd.f32 %v35_v11, %v34_v9  ;;  %v42_v15 = vadd.f32 %v41_v12, %v40_v10 }
  0x20   :  { %v46_v16 = vsel %vm45_vm0, %v42_v15, %v36_v14 }
  0x21   :  { %v48_v17 = vadd.f32 %v46_v16, %v30_v13 }
  0x23   :  { %49 = vst [vmem:[#allocation2] sm:$0x3] %v48_v17 }
  0x2a   :  { %v53_v18 = vld [vmem:[#allocation2] sm:$0x3] }
  0x2b   :  { %v54_v19 = vmul.f32 0.125, %v53_v18 }
  0x2d   :  { %55 = vst [vmem:[#allocation6] sm:$0x3] %v54_v19 }
  0x2e   :  { %109 = shalt.err (!%p106_p12)
}
  0x2f   :  { %s110_s24 = scalar_lea.hbm %s164_s1, 32 }
  0x30   :  { %p111_p13 = scmp.ne.s32.totalorder %s164_s1, %s110_s24  ;;  %p114_p0 = scmp.lt.u32.totalorder %s110_s24, %s164_s1 }
  0x32   :  { %p116_p1 = pnand %p114_p0, %p111_p13 }
  0x34   :  { %119 = shalt.err (!%p116_p1)
}
  0x35   :  { %65 = dma.vmem_to_hbm [thread:$0]  %s63_s20, 32, %s164_s1, [#allocation5]  }
  0x36   :  { %122 = dma.done.wait [#allocation5], 32  }
  0x37   :  { %123 = vsyncadd [#allocation5], 4294967264 }
  0x38   :  { %69 = vsyncpa [#allocation4], 1 }
  0x39   :  { %70 = vsyncpa [#allocation5], 1 }

</bundles_post_ra>
